<compile_context>
chip_gen: v7x
topology: tpu7x:2x2x1
jax: 0.10.0
libtpu: 0.0.40
codegen_flags: <defaults>
</compile_context>

<pallas_src>
import jax
import jax.numpy as jnp
from jax.experimental import pallas as pl
from jax.experimental.pallas import tpu as pltpu

HIDDEN_NEURONS = [8, 8, 8]
OUTPUT_SIZE = 100
NEG_SLOPE = 0.01          # nn.LeakyReLU default negative_slope
MIN_TILE = 8              # f32 sublane granularity
TB_MAX = 4096             # max batch tile (rows); amortizes per-grid-step overhead


def _leaky_relu(v):
    return jnp.where(v > 0, v, NEG_SLOPE * v)


def mlp_kernel(x_ref, w1_ref, b1_ref, w2_ref, b2_ref, w3_ref, b3_ref, o_ref):
    # One (tb, 8) batch tile per grid step; all weights resident in VMEM.
    x = x_ref[...]
    h = jnp.dot(x, w1_ref[...], preferred_element_type=jnp.float32) + b1_ref[...]
    h = _leaky_relu(h)
    h = jnp.dot(h, w2_ref[...], preferred_element_type=jnp.float32) + b2_ref[...]
    h = _leaky_relu(h)
    o = jnp.dot(h, w3_ref[...], preferred_element_type=jnp.float32) + b3_ref[...]
    o_ref[...] = o.astype(o_ref.dtype)   # (tb, 100) store — single HBM pass


def _choose_batch_tile(batch):
    """Right-sized batch tile: multiple of 8, <= TB_MAX, even step count for
    large batches so v7x's 2 TensorCores both get work."""
    n_steps = pl.cdiv(batch, TB_MAX)
    if batch > TB_MAX and n_steps % 2:
        n_steps += 1
    n_steps = max(n_steps, 1)
    tb = max(MIN_TILE, pl.cdiv(batch, n_steps * MIN_TILE) * MIN_TILE)
    return tb


def neural_net_forward(x, params, out_dtype=jnp.float32):
    # out_dtype=jnp.bfloat16 halves the dominant output HBM write if downstream
    # consumers tolerate it; default stays f32 for parity with the reference.
    w1, b1, w2, b2, w3, b3 = params
    batch, feat = x.shape
    out_f = w3.shape[1]

    tb = _choose_batch_tile(batch)
    padded_b = pl.cdiv(batch, tb) * tb
    xp = jnp.pad(x, ((0, padded_b - batch), (0, 0))) if padded_b != batch else x
    n_steps = padded_b // tb

    const2d = lambda i: (0, 0)  # weights/biases: same block every grid step

    itemsize = 4  # f32 params/input
    flops = 2 * padded_b * (w1.shape[0] * w1.shape[1]
                            + w2.shape[0] * w2.shape[1]
                            + w3.shape[0] * w3.shape[1])
    bytes_accessed = (padded_b * feat * itemsize
                      + padded_b * out_f * jnp.dtype(out_dtype).itemsize
                      + sum(int(p.size) for p in (w1, b1, w2, b2, w3, b3)) * itemsize)

    out = pl.pallas_call(
        mlp_kernel,
        out_shape=jax.ShapeDtypeStruct((padded_b, out_f), out_dtype),
        grid=(n_steps,),
        in_specs=[
            pl.BlockSpec((tb, feat), lambda i: (i, 0)),
            pl.BlockSpec(w1.shape, const2d),
            pl.BlockSpec(b1.shape, const2d),
            pl.BlockSpec(w2.shape, const2d),
            pl.BlockSpec(b2.shape, const2d),
            pl.BlockSpec(w3.shape, const2d),
            pl.BlockSpec(b3.shape, const2d),
        ],
        out_specs=pl.BlockSpec((tb, out_f), lambda i: (i, 0)),
        compiler_params=pltpu.CompilerParams(
            dimension_semantics=("parallel",),  # shard batch grid across TCs (v7x)
        ),
        cost_estimate=pl.CostEstimate(
            flops=int(flops),
            transcendentals=0,
            bytes_accessed=int(bytes_accessed),
        ),
    )(xp, w1, b1, w2, b2, w3, b3)

    return out if padded_b == batch else out[:batch]


def init_params(key):
    # Deterministic synthetic init (PyTorch-style uniform(-1/sqrt(fan_in), 1/sqrt(fan_in))).
    ks = jax.random.split(key, 6)

    def linear(kw, kb, fan_in, fan_out):
        bound = 1.0 / jnp.sqrt(fan_in)
        w = jax.random.uniform(kw, (fan_in, fan_out), jnp.float32, -bound, bound)
        b = jax.random.uniform(kb, (1, fan_out), jnp.float32, -bound, bound)
        return w, b

    w1, b1 = linear(ks[0], ks[1], HIDDEN_NEURONS[0], HIDDEN_NEURONS[1])
    w2, b2 = linear(ks[2], ks[3], HIDDEN_NEURONS[1], HIDDEN_NEURONS[2])
    w3, b3 = linear(ks[4], ks[5], HIDDEN_NEURONS[2], OUTPUT_SIZE)
    return (w1, b1, w2, b2, w3, b3)


def reference_forward(x, params):
    w1, b1, w2, b2, w3, b3 = params
    h = _leaky_relu(x @ w1 + b1)
    h = _leaky_relu(h @ w2 + b2)
    return h @ w3 + b3


if __name__ == "__main__":
    key = jax.random.PRNGKey(0)
    k_x, k_x2, k_x3, k_p = jax.random.split(key, 4)
    params = init_params(k_p)

    # Small, tile-aligned batch (single grid step, no padding).
    batch = 8
    x = jax.random.normal(k_x, (batch, HIDDEN_NEURONS[0]), jnp.float32)
    out = jax.block_until_ready(neural_net_forward(x, params))
    ref = reference_forward(x, params)
    assert out.shape == (batch, OUTPUT_SIZE)
    assert jnp.allclose(out, ref, atol=1e-5, rtol=1e-5)

    # Batch not a multiple of 8 -> exercises the row-padding / remainder path.
    batch2 = 20
    x2 = jax.random.normal(k_x2, (batch2, HIDDEN_NEURONS[0]), jnp.float32)
    out2 = jax.block_until_ready(neural_net_forward(x2, params))
    ref2 = reference_forward(x2, params)
    assert out2.shape == (batch2, OUTPUT_SIZE)
    assert jnp.allclose(out2, ref2, atol=1e-5, rtol=1e-5)

    # Mid-size batch -> exercises the right-sized-tile path (still one DMA pass).
    batch3 = 300
    x3 = jax.random.normal(k_x3, (batch3, HIDDEN_NEURONS[0]), jnp.float32)
    out3 = jax.block_until_ready(neural_net_forward(x3, params))
    ref3 = reference_forward(x3, params)
    assert out3.shape == (batch3, OUTPUT_SIZE)
    assert jnp.allclose(out3, ref3, atol=1e-5, rtol=1e-5)

    print("KERNEL_OK")
</pallas_src>

<mosaic_0001>
module attributes {stable_mosaic.version = 11 : i64} {
  func.func @mlp_kernel(%arg0: i32, %arg1: memref<8x8xf32, #tpu.memory_space<vmem>>, %arg2: memref<8x8xf32, #tpu.memory_space<vmem>>, %arg3: memref<1x8xf32, #tpu.memory_space<vmem>>, %arg4: memref<8x8xf32, #tpu.memory_space<vmem>>, %arg5: memref<1x8xf32, #tpu.memory_space<vmem>>, %arg6: memref<8x100xf32, #tpu.memory_space<vmem>>, %arg7: memref<1x100xf32, #tpu.memory_space<vmem>>, %arg8: memref<8x100xf32, #tpu.memory_space<vmem>>) attributes {dimension_semantics = [#tpu.dimension_semantics<parallel>], iteration_bounds = array<i64: 1>, scalar_prefetch = 0 : i64, scratch_operands = 0 : i64, tpu.core_type = #tpu.core_type<tc>, window_params = [{transform_indices = @transform_0, window_bounds = array<i64: 8, 8>}, {pipeline_mode = #tpu.pipeline_mode<synchronous>, transform_indices = @transform_1, window_bounds = array<i64: 8, 8>}, {pipeline_mode = #tpu.pipeline_mode<synchronous>, transform_indices = @transform_2, window_bounds = array<i64: 1, 8>}, {pipeline_mode = #tpu.pipeline_mode<synchronous>, transform_indices = @transform_3, window_bounds = array<i64: 8, 8>}, {pipeline_mode = #tpu.pipeline_mode<synchronous>, transform_indices = @transform_4, window_bounds = array<i64: 1, 8>}, {pipeline_mode = #tpu.pipeline_mode<synchronous>, transform_indices = @transform_5, window_bounds = array<i64: 8, 100>}, {pipeline_mode = #tpu.pipeline_mode<synchronous>, transform_indices = @transform_6, window_bounds = array<i64: 1, 100>}, {transform_indices = @transform_7, window_bounds = array<i64: 8, 100>}]} {
    %c0 = arith.constant 0 : index
    %c0_0 = arith.constant 0 : index
    %0 = vector.load %arg1[%c0, %c0_0] : memref<8x8xf32, #tpu.memory_space<vmem>>, vector<8x8xf32>
    %c0_1 = arith.constant 0 : index
    %c0_2 = arith.constant 0 : index
    %1 = vector.load %arg2[%c0_1, %c0_2] : memref<8x8xf32, #tpu.memory_space<vmem>>, vector<8x8xf32>
    %cst = arith.constant dense<0.000000e+00> : vector<8x8xf32>
    %2 = tpu.matmul %0, %1, %cst {dimension_numbers = #tpu.dot_dimension_numbers<[1], [0], [0], [1], [0, 0, 1, 1], [], []>} : vector<8x8xf32>, vector<8x8xf32>, vector<8x8xf32> -> vector<8x8xf32>
    %c0_3 = arith.constant 0 : index
    %c0_4 = arith.constant 0 : index
    %3 = vector.load %arg3[%c0_3, %c0_4] : memref<1x8xf32, #tpu.memory_space<vmem>>, vector<1x8xf32>
    %4 = vector.broadcast %3 : vector<1x8xf32> to vector<8x8xf32>
    %5 = arith.addf %2, %4 : vector<8x8xf32>
    %cst_5 = arith.constant 0.000000e+00 : f32
    %6 = vector.broadcast %cst_5 : f32 to vector<8x8xf32>
    %7 = arith.cmpf ogt, %5, %6 : vector<8x8xf32>
    %cst_6 = arith.constant 0.00999999977 : f32
    %8 = vector.broadcast %cst_6 : f32 to vector<8x8xf32>
    %9 = arith.mulf %8, %5 : vector<8x8xf32>
    %10 = arith.select %7, %5, %9 : vector<8x8xi1>, vector<8x8xf32>
    %c0_7 = arith.constant 0 : index
    %c0_8 = arith.constant 0 : index
    %11 = vector.load %arg4[%c0_7, %c0_8] : memref<8x8xf32, #tpu.memory_space<vmem>>, vector<8x8xf32>
    %cst_9 = arith.constant dense<0.000000e+00> : vector<8x8xf32>
    %12 = tpu.matmul %10, %11, %cst_9 {dimension_numbers = #tpu.dot_dimension_numbers<[1], [0], [0], [1], [0, 0, 1, 1], [], []>} : vector<8x8xf32>, vector<8x8xf32>, vector<8x8xf32> -> vector<8x8xf32>
    %c0_10 = arith.constant 0 : index
    %c0_11 = arith.constant 0 : index
    %13 = vector.load %arg5[%c0_10, %c0_11] : memref<1x8xf32, #tpu.memory_space<vmem>>, vector<1x8xf32>
    %14 = vector.broadcast %13 : vector<1x8xf32> to vector<8x8xf32>
    %15 = arith.addf %12, %14 : vector<8x8xf32>
    %cst_12 = arith.constant 0.000000e+00 : f32
    %16 = vector.broadcast %cst_12 : f32 to vector<8x8xf32>
    %17 = arith.cmpf ogt, %15, %16 : vector<8x8xf32>
    %cst_13 = arith.constant 0.00999999977 : f32
    %18 = vector.broadcast %cst_13 : f32 to vector<8x8xf32>
    %19 = arith.mulf %18, %15 : vector<8x8xf32>
    %20 = arith.select %17, %15, %19 : vector<8x8xi1>, vector<8x8xf32>
    %c0_14 = arith.constant 0 : index
    %c0_15 = arith.constant 0 : index
    %21 = vector.load %arg6[%c0_14, %c0_15] : memref<8x100xf32, #tpu.memory_space<vmem>>, vector<8x100xf32>
    %cst_16 = arith.constant dense<0.000000e+00> : vector<8x100xf32>
    %22 = tpu.matmul %20, %21, %cst_16 {dimension_numbers = #tpu.dot_dimension_numbers<[1], [0], [0], [1], [0, 0, 1, 1], [], []>} : vector<8x8xf32>, vector<8x100xf32>, vector<8x100xf32> -> vector<8x100xf32>
    %c0_17 = arith.constant 0 : index
    %c0_18 = arith.constant 0 : index
    %23 = vector.load %arg7[%c0_17, %c0_18] : memref<1x100xf32, #tpu.memory_space<vmem>>, vector<1x100xf32>
    %24 = vector.broadcast %23 : vector<1x100xf32> to vector<8x100xf32>
    %25 = arith.addf %22, %24 : vector<8x100xf32>
    %c0_19 = arith.constant 0 : index
    %c0_20 = arith.constant 0 : index
    %26 = vector.load %arg8[%c0_19, %c0_20] : memref<8x100xf32, #tpu.memory_space<vmem>>, vector<8x100xf32>
    tpu.vector_store %arg8[%c0_19, %c0_20], %25 {strides = array<i32>} : memref<8x100xf32, #tpu.memory_space<vmem>>, vector<8x100xf32>,
    return
  }
  func.func @transform_0(%arg0: i32) -> (i32, i32) {
    %c0_i32 = arith.constant 0 : i32
    %c0_i32_0 = arith.constant 0 : i32
    return %arg0, %c0_i32 : i32, i32
  }
  func.func @transform_1(%arg0: i32) -> (i32, i32) {
    %c0_i32 = arith.constant 0 : i32
    %c0_i32_0 = arith.constant 0 : i32
    %c0_i32_1 = arith.constant 0 : i32
    return %c0_i32, %c0_i32_0 : i32, i32
  }
  func.func @transform_2(%arg0: i32) -> (i32, i32) {
    %c0_i32 = arith.constant 0 : i32
    %c0_i32_0 = arith.constant 0 : i32
    %c0_i32_1 = arith.constant 0 : i32
    return %c0_i32, %c0_i32_0 : i32, i32
  }
  func.func @transform_3(%arg0: i32) -> (i32, i32) {
    %c0_i32 = arith.constant 0 : i32
    %c0_i32_0 = arith.constant 0 : i32
    %c0_i32_1 = arith.constant 0 : i32
    return %c0_i32, %c0_i32_0 : i32, i32
  }
  func.func @transform_4(%arg0: i32) -> (i32, i32) {
    %c0_i32 = arith.constant 0 : i32
    %c0_i32_0 = arith.constant 0 : i32
    %c0_i32_1 = arith.constant 0 : i32
    return %c0_i32, %c0_i32_0 : i32, i32
  }
  func.func @transform_5(%arg0: i32) -> (i32, i32) {
    %c0_i32 = arith.constant 0 : i32
    %c0_i32_0 = arith.constant 0 : i32
    %c0_i32_1 = arith.constant 0 : i32
    return %c0_i32, %c0_i32_0 : i32, i32
  }
  func.func @transform_6(%arg0: i32) -> (i32, i32) {
    %c0_i32 = arith.constant 0 : i32
    %c0_i32_0 = arith.constant 0 : i32
    %c0_i32_1 = arith.constant 0 : i32
    return %c0_i32, %c0_i32_0 : i32, i32
  }
  func.func @transform_7(%arg0: i32) -> (i32, i32) {
    %c0_i32 = arith.constant 0 : i32
    %c0_i32_0 = arith.constant 0 : i32
    return %arg0, %c0_i32 : i32, i32
  }
}

</mosaic_0001>

<bundles_post_ra>
// kernel: tpu_custom_call.1
= control target key start
LH: loop header
LB: loop body
LE: loop exit
PB: predicated region body
PF: predicated region fallthrough
CT: control target
= control target key end

     0   :  { %12 = vsyncpa [#allocation3], 0  ;;  %s523_s0 = inlined_call_operand.hbm [shape: f32[8,8], index: 0, kind: input, shape index: {}]   ;;  %s524_s1 = inlined_call_operand.hbm [shape: f32[8,8], index: 1, kind: input, shape index: {}]   ;;  %s525_s2 = inlined_call_operand.vmem [shape: f32[1,8], index: 2, kind: input, shape index: {}]   ;;  %s526_s3 = inlined_call_operand.vmem [shape: f32[8,8], index: 3, kind: input, shape index: {}]   ;;  %s527_s4 = inlined_call_operand.vmem [shape: f32[1,8], index: 4, kind: input, shape index: {}]   ;;  %s528_s5 = inlined_call_operand.vmem [shape: f32[8,100], index: 5, kind: input, shape index: {}]   ;;  %s529_s6 = inlined_call_operand.vmem [shape: f32[1,100], index: 6, kind: input, shape index: {}]   ;;  %s530_s7 = inlined_call_operand.hbm [shape: f32[8,100], index: 7, kind: output, shape index: {}]  }
   0x1   :  { %13 = vsyncpa [#allocation6], 0 }
   0x2   :  { %14 = vsyncpa [#allocation4], 0  ;;  %s424_s24 = smov [#allocation2]   ;;  %s425_s26 = smov [#allocation5]  }
   0x3   :  { %s21_s25 = sshll.u32 %s424_s24, 4  ;;  %s31_s27 = sshll.u32 %s425_s26, 4  ;;  %s22_s25 = int_to_ptr.vmem [resolvable:$true] %s21_s25  ;;  %s32_s27 = int_to_ptr.vmem [resolvable:$true] %s31_s27 }
   0x4   :  { %s352_s30 = scalar_lea.hbm %s523_s0, 128 }
   0x5   :  { %p353_p0 = scmp.ne.s32.totalorder %s523_s0, %s352_s30  ;;  %p356_p1 = scmp.lt.u32.totalorder %s352_s30, %s523_s0 }
   0x7   :  { %p358_p2 = pnand %p356_p1, %p353_p0 }
   0x9   :  { %361 = shalt.err (!%p358_p2)
}
   0xa   :  { %s362_s12 = scalar_lea.vmem %s22_s25, 128  ;;  %p367_p4 = scmp.lt.s32.totalorder %s22_s25, %s22_s25 }
   0xb   :  { %p363_p3 = scmp.ne.s32.totalorder %s22_s25, %s362_s12  ;;  %p368_p5 = scmp.lt.s32.totalorder %s362_s12, %s362_s12 }
   0xd   :  { %p369_p6 = por %p368_p5, %p367_p4 }
   0xf   :  { %p370_p7 = pnand %p369_p6, %p363_p3 }
  0x11   :  { %373 = shalt.err (!%p370_p7)
}
  0x12   :  { %24 = dma.hbm_to_vmem [thread:$0]  %s523_s0, 128, %s22_s25, [#allocation3]  }
  0x13   :  { %s374_s17 = scalar_lea.hbm %s524_s1, 128 }
  0x14   :  { %p375_p8 = scmp.ne.s32.totalorder %s524_s1, %s374_s17  ;;  %p378_p9 = scmp.lt.u32.totalorder %s374_s17, %s524_s1 }
  0x16   :  { %p380_p10 = pnand %p378_p9, %p375_p8 }
  0x18   :  { %383 = shalt.err (!%p380_p10)
}
  0x19   :  { %s384_s22 = scalar_lea.vmem %s32_s27, 128  ;;  %p389_p12 = scmp.lt.s32.totalorder %s32_s27, %s32_s27 }
  0x1a   :  { %p385_p11 = scmp.ne.s32.totalorder %s32_s27, %s384_s22  ;;  %p390_p13 = scmp.lt.s32.totalorder %s384_s22, %s384_s22 }
  0x1c   :  { %p391_p0 = por %p390_p13, %p389_p12 }
  0x1e   :  { %p392_p1 = pnand %p391_p0, %p385_p11 }
  0x20   :  { %395 = shalt.err (!%p392_p1)
}
  0x21   :  { %34 = dma.hbm_to_vmem [thread:$0]  %s524_s1, 128, %s32_s27, [#allocation6]  }
  0x22   :  { %418 = dma.done.wait [#allocation3], 128  }
  0x23   :  { %419 = vsyncadd [#allocation3], 4294967168 }
  0x24   :  { %420 = dma.done.wait [#allocation6], 128  }
  0x25   :  { %421 = vsyncadd [#allocation6], 4294967168  ;;  %v426_v0 = vmov 0.0   ;;  %vm427_vm0 = vmmov 0   ;;  %vm60_vm1 = vcmask 64512   ;;  %v52_v1 = vld [vmem:[#allocation5] sm:$0xff] }
  0x26   :  { %332 = vmatprep.subr.mxu0 %v426_v0  ;;  %334 = vmatprep.mubr.msk.f32.mxu0 %vm427_vm0, %v426_v0  ;;  %v51_v2 = vld [vmem:[#allocation2] sm:$0xff]  ;;  %s428_s8 = smov [#allocation7]   ;;  %vm302_vm4 = vcmask 818176  }
  0x27   :  { %337 = vmatprep.subr.mxu1 %v426_v0  ;;  %339 = vmatprep.mubr.msk.f32.mxu1 %vm427_vm0, %v426_v0  ;;  %v137_v3 = vld [vmem:[%s526_s3] sm:$0xff]  ;;  %s310_s9 = sshll.u32 %s428_s8, 4  ;;  %s311_s9 = int_to_ptr.vmem [resolvable:$true] %s310_s9 }
  0x28   :  { %333 = vmatpush3.msra.mxu0 %v52_v1  ;;  %338 = vmatpush3.msra.mxu1 %v137_v3  ;;  %v320_v4 = vld [vmem:[%s525_s2] ss:$0 sm:$0xff]  ;;  %p401_p3 = scmp.lt.s32.totalorder %s311_s9, %s311_s9 }
  0x29   :  { %335 = vmatmul.mubr.msk.f32.vlgmr.msra.gmra.mrb[0].mxu0 %vm60_vm1, %v51_v2  ;;  %342 = vmatprep.subr.mxu0 %v426_v0  ;;  %v221_v10 = vld [vmem:[%s528_s5] sm:$0xff] }
  0x2a   :  { %344 = vmatprep.mubr.msk.f32.mxu0 %vm427_vm0, %v426_v0  ;;  %343 = vmatpush3.msra.mxu0 %v221_v10  ;;  %v322_v11 = vld [vmem:[%s527_s4] ss:$0 sm:$0xff]  ;;  %s396_s4 = scalar_lea.vmem %s311_s9, 128 }
  0x2b   :  { %v324_v17 = vld [vmem:[%s529_s6] ss:$0 sm:$0xff]  ;;  %p397_p2 = scmp.ne.s32.totalorder %s311_s9, %s396_s4  ;;  %p402_p4 = scmp.lt.s32.totalorder %s396_s4, %s396_s4 }
  0x2d   :  { %p403_p5 = por %p402_p4, %p401_p3 }
  0x2f   :  { %p404_p6 = pnand %p403_p5, %p397_p2 }
  0xfc   :  { %v130_v5 = vpop.f32.mrb[0].mxu0 }
  0xfd   :  { %v131_v6 = vadd.f32 %v320_v4, %v130_v5  ;;  %v336_v7 = vpop.f32.mrb[1].mxu0 }
  0xff   :  { %vm134_vm2 = vcmp.gt.f32.partialorder %v131_v6, 0.0  ;;  %v135_v8 = vmul.f32 0.01, %v131_v6 }
 0x101   :  { %v136_v9 = vsel %vm134_vm2, %v131_v6, %v135_v8 }
 0x102   :  { %340 = vmatmul.mubr.msk.f32.vlgmr.msra.gmra.mrb[0].mxu1 %vm60_vm1, %v136_v9 }
 0x1d5   :  { %v214_v12 = vpop.f32.mrb[0].mxu1 }
 0x1d6   :  { %v215_v13 = vadd.f32 %v322_v11, %v214_v12  ;;  %v341_v14 = vpop.f32.mrb[1].mxu1 }
 0x1d8   :  { %vm218_vm3 = vcmp.gt.f32.partialorder %v215_v13, 0.0  ;;  %v219_v15 = vmul.f32 0.01, %v215_v13 }
 0x1da   :  { %v220_v16 = vsel %vm218_vm3, %v215_v13, %v219_v15 }
 0x1db   :  { %345 = vmatmul.mubr.msk.f32.vlgmr.msra.gmra.mrb[2].mxu0 %vm60_vm1, %v220_v16 }
 0x2ae   :  { %v298_v18 = vpop.f32.mrb[2].mxu0 }
 0x2af   :  { %v299_v19 = vadd.f32 %v324_v17, %v298_v18  ;;  %v346_v20 = vpop.f32.mrb[3].mxu0 }
 0x2b1   :  { %303 = vst.msk [vmem:[#allocation7] sm:$0xff] %vm302_vm4, %v299_v19 }
 0x2b2   :  { %407 = shalt.err (!%p404_p6)
}
 0x2b3   :  { %s408_s11 = scalar_lea.hbm %s530_s7, 128 }
 0x2b4   :  { %p409_p7 = scmp.ne.s32.totalorder %s530_s7, %s408_s11  ;;  %p412_p8 = scmp.lt.u32.totalorder %s408_s11, %s530_s7 }
 0x2b6   :  { %p414_p9 = pnand %p412_p8, %p409_p7 }
 0x2b8   :  { %417 = shalt.err (!%p414_p9)
}
 0x2b9   :  { %313 = dma.vmem_to_hbm [thread:$0]  %s311_s9, 128, %s530_s7, [#allocation4]  }
 0x2ba   :  { %422 = dma.done.wait [#allocation4], 128  }
 0x2bb   :  { %423 = vsyncadd [#allocation4], 4294967168 }
 0x2bc   :  { %317 = vsyncpa [#allocation3], 1 }
 0x2bd   :  { %318 = vsyncpa [#allocation6], 1 }
 0x2be   :  { %319 = vsyncpa [#allocation4], 1 }

</bundles_post_ra>
